<compile_context>
chip_gen: v7x
topology: tpu7x:2x2x1
jax: 0.10.0
libtpu: 0.0.40
codegen_flags: <defaults>
</compile_context>

<pallas_src>
import functools

import jax
import jax.numpy as jnp
from jax import lax
from jax.experimental import pallas as pl
from jax.experimental.pallas import tpu as pltpu

SDF_LAMBDA = 3000.0
INTER_LAMBDA = 100.0
NORMAL_LAMBDA = 100.0
GRAD_LAMBDA = 50.0
COS_EPS = 1e-8  # F.cosine_similarity default eps

# Channel rows of the packed slab.
_ROW_SDF, _ROW_PRED = 0, 1
_ROW_GX, _ROW_GY, _ROW_GZ = 2, 3, 4
_ROW_NX, _ROW_NY, _ROW_NZ = 5, 6, 7

# Point-tile granularity: each VMEM block is (8, r, 128) with r a multiple of 8
# (sublane tiling constraint), i.e. the point tile is a multiple of 8*128.
_TILE_QUANTUM = 8 * 128
_DEFAULT_TILE_M = 4096  # points per grid step (128 KiB of f32 slab per block)


def _round_up(x, m):
    return (x + m - 1) // m * m


def _loss_siren_kernel(slab_ref, out_ref, acc_ref, *, num_points):
    """One grid step: accumulate the 4 loss sums over a tile of points."""
    i = pl.program_id(0)

    @pl.when(i == 0)
    def _init():
        acc_ref[0] = jnp.float32(0.0)
        acc_ref[1] = jnp.float32(0.0)
        acc_ref[2] = jnp.float32(0.0)
        acc_ref[3] = jnp.float32(0.0)

    # Dense (r, 128) planes — full vreg utilisation per channel.
    sdf = slab_ref[_ROW_SDF].astype(jnp.float32)
    pred = slab_ref[_ROW_PRED].astype(jnp.float32)
    gx = slab_ref[_ROW_GX].astype(jnp.float32)
    gy = slab_ref[_ROW_GY].astype(jnp.float32)
    gz = slab_ref[_ROW_GZ].astype(jnp.float32)
    nx = slab_ref[_ROW_NX].astype(jnp.float32)
    ny = slab_ref[_ROW_NY].astype(jnp.float32)
    nz = slab_ref[_ROW_NZ].astype(jnp.float32)

    r, l = sdf.shape          # (tile_m // 128, 128), static
    tile_m = r * l

    # Validity mask for the zero-padded tail of the last tile.
    row_idx = lax.broadcasted_iota(jnp.int32, (r, l), 0)
    lane_idx = lax.broadcasted_iota(jnp.int32, (r, l), 1)
    flat_idx = i * tile_m + row_idx * l + lane_idx
    valid = flat_idx < num_points

    on_surface = sdf != -1.0
    on_valid = jnp.logical_and(on_surface, valid)
    off_valid = jnp.logical_and(jnp.logical_not(on_surface), valid)

    abs_pred = jnp.abs(pred)
    sdf_c = jnp.where(on_valid, abs_pred, 0.0)
    inter_c = jnp.where(off_valid, jnp.exp(-100.0 * abs_pred), 0.0)

    grad_norm = jnp.sqrt(gx * gx + gy * gy + gz * gz)
    n_norm = jnp.sqrt(nx * nx + ny * ny + nz * nz)
    dot = gx * nx + gy * ny + gz * nz
    # cosine_similarity with per-norm eps clamp (torch convention); the divide
    # is routed to the (otherwise idle) EUP via approximate reciprocal.
    denom = jnp.maximum(grad_norm, COS_EPS) * jnp.maximum(n_norm, COS_EPS)
    cos = dot * pl.reciprocal(denom, approx=True)
    normal_c = jnp.where(on_valid, 1.0 - cos, 0.0)
    grad_c = jnp.where(valid, jnp.abs(grad_norm - 1.0), 0.0)

    acc_ref[0] = acc_ref[0] + jnp.sum(sdf_c)
    acc_ref[1] = acc_ref[1] + jnp.sum(inter_c)
    acc_ref[2] = acc_ref[2] + jnp.sum(normal_c)
    acc_ref[3] = acc_ref[3] + jnp.sum(grad_c)

    @pl.when(i == pl.num_programs(0) - 1)
    def _finalize():
        inv_m = jnp.float32(1.0 / num_points)
        loss_sdf = acc_ref[0] * inv_m
        loss_inter = acc_ref[1] * inv_m
        loss_normal = acc_ref[2] * inv_m
        loss_grad = acc_ref[3] * inv_m
        out_ref[0] = (loss_sdf * SDF_LAMBDA + loss_inter * INTER_LAMBDA
                      + loss_normal * NORMAL_LAMBDA + loss_grad * GRAD_LAMBDA)
        out_ref[1] = loss_sdf
        out_ref[2] = loss_inter
        out_ref[3] = loss_normal
        out_ref[4] = loss_grad


def loss_siren(gt_sdf, gt_normals, grad, pred_sdf, *, tile_m=_DEFAULT_TILE_M):
    """Pallas implementation of loss_siren.forward.

    gt_sdf:     [B, N, 1]
    gt_normals: [B, N, 3]
    grad:       [B, N, 3]  (d pred_sdf / d coords, see note in __main__)
    pred_sdf:   [B, N, 1]
    """
    B, N = gt_sdf.shape[0], gt_sdf.shape[1]
    M = B * N
    f32 = jnp.float32

    # Lane-dense repack: one [8, M] slab (rows: sdf, pred, gx, gy, gz, nx, ny, nz).
    # NOTE: if upstream tensors are bf16, the slab could be kept bf16 (upcast
    # in-kernel) to halve HBM traffic; inputs here are f32 so we pack f32.
    slab = jnp.concatenate(
        [
            gt_sdf.reshape(1, M).astype(f32),
            pred_sdf.reshape(1, M).astype(f32),
            grad.reshape(M, 3).astype(f32).T,          # (3, M)
            gt_normals.reshape(M, 3).astype(f32).T,    # (3, M)
        ],
        axis=0,
    )  # [8, M]

    tile_m = max(_TILE_QUANTUM, _round_up(int(tile_m), _TILE_QUANTUM))
    tile_m = min(tile_m, _round_up(M, _TILE_QUANTUM))
    m_pad = _round_up(M, tile_m)
    if m_pad != M:
        slab = jnp.pad(slab, ((0, 0), (0, m_pad - M)))
    slab = slab.reshape(8, m_pad // 128, 128)
    num_tiles = m_pad // tile_m
    r_block = tile_m // 128

    kernel = functools.partial(_loss_siren_kernel, num_points=M)
    terms = pl.pallas_call(
        kernel,
        out_shape=jax.ShapeDtypeStruct((5,), jnp.float32),
        grid=(num_tiles,),
        in_specs=[pl.BlockSpec((8, r_block, 128), lambda i: (0, i, 0))],
        out_specs=pl.BlockSpec(memory_space=pltpu.MemorySpace.SMEM),
        scratch_shapes=[pltpu.SMEM((4,), jnp.float32)],
        compiler_params=pltpu.CompilerParams(
            dimension_semantics=("arbitrary",),
            vmem_limit_bytes=32 * 1024 * 1024,
        ),
    )(slab)

    return {
        'loss': terms[0],
        'sdf_term': terms[1],
        'inter_term': terms[2],
        'normal_term': terms[3],
        'grad_term': terms[4],
    }


# ---------------------------------------------------------------------------
# Pure-JAX reference (for the self-test) and a small deterministic SIREN
# predictor so we can form pred_sdf = f(coords) and its spatial gradient
# (the torch module calls torch.autograd.grad).
# ---------------------------------------------------------------------------
def loss_siren_reference(gt_sdf, gt_normals, grad, pred_sdf):
    on = gt_sdf != -1.0
    sdf_c = jnp.where(on, pred_sdf, 0.0)
    inter_c = jnp.where(on, 0.0, jnp.exp(-100.0 * jnp.abs(pred_sdf)))
    gn = jnp.linalg.norm(grad, axis=-1, keepdims=True)
    nn = jnp.linalg.norm(gt_normals, axis=-1, keepdims=True)
    cos = jnp.sum(grad * gt_normals, axis=-1, keepdims=True) / (
        jnp.maximum(gn, COS_EPS) * jnp.maximum(nn, COS_EPS))
    normal_c = jnp.where(on, 1.0 - cos, 0.0)
    grad_c = jnp.abs(gn[..., 0] - 1.0)
    ls = jnp.mean(jnp.abs(sdf_c))
    li = jnp.mean(inter_c)
    ln = jnp.mean(normal_c)
    lg = jnp.mean(grad_c)
    loss = ls * SDF_LAMBDA + li * INTER_LAMBDA + ln * NORMAL_LAMBDA + lg * GRAD_LAMBDA
    return loss, ls, li, ln, lg


def init_siren_params(key, in_dim=3, hidden=32, out_dim=1):
    k1, k2, k3 = jax.random.split(key, 3)
    w0 = jax.random.uniform(k1, (in_dim, hidden), jnp.float32, -1.0 / in_dim, 1.0 / in_dim)
    b0 = jnp.zeros((hidden,), jnp.float32)
    lim = (6.0 / hidden) ** 0.5 / 30.0
    w1 = jax.random.uniform(k2, (hidden, hidden), jnp.float32, -lim, lim)
    b1 = jnp.zeros((hidden,), jnp.float32)
    w2 = jax.random.uniform(k3, (hidden, out_dim), jnp.float32, -lim, lim)
    b2 = jnp.zeros((out_dim,), jnp.float32)
    return [(w0, b0), (w1, b1), (w2, b2)]


def siren_forward(params, x):
    (w0, b0), (w1, b1), (w2, b2) = params
    h = jnp.sin(30.0 * (x @ w0 + b0))
    h = jnp.sin(30.0 * (h @ w1 + b1))
    return h @ w2 + b2


if __name__ == "__main__":
    key = jax.random.PRNGKey(0)
    B, N, D, H = 2, 1250, 3, 32
    k1, k2, k3, k4 = jax.random.split(key, 4)

    coords = jax.random.uniform(k1, (B, N, D), jnp.float32, -1.0, 1.0)
    # Half the points are "on surface" (gt_sdf == 0), the rest free space (gt_sdf == -1).
    on_mask = jax.random.uniform(k2, (B, N, 1)) > 0.5
    gt_sdf = jnp.where(on_mask, 0.0, -1.0).astype(jnp.float32)
    normals_raw = jax.random.normal(k3, (B, N, D), jnp.float32)
    gt_normals = normals_raw / jnp.linalg.norm(normals_raw, axis=-1, keepdims=True)

    params = init_siren_params(k4, D, H)
    pred_sdf = siren_forward(params, coords)  # [B, N, 1]
    # TODO(synk): torch.autograd.grad through the upstream predictor has no Pallas
    # equivalent; the spatial gradient is produced with jax.grad in plain JAX glue.
    grad = jax.grad(lambda c: jnp.sum(siren_forward(params, c)))(coords)  # [B, N, 3]

    # tile_m=1024 on this small problem exercises the multi-tile grid and the
    # masked zero-padded tail; the production default is 4096.
    out = loss_siren(gt_sdf, gt_normals, grad, pred_sdf, tile_m=1024)
    jax.block_until_ready(out['loss'])

    ref = loss_siren_reference(gt_sdf, gt_normals, grad, pred_sdf)
    names = ['loss', 'sdf_term', 'inter_term', 'normal_term', 'grad_term']
    for name, ref_val in zip(names, ref):
        rel = abs(float(out[name]) - float(ref_val)) / (abs(float(ref_val)) + 1e-6)
        assert rel < 2e-2, (name, float(out[name]), float(ref_val))

    print("KERNEL_OK")
</pallas_src>

<mosaic_0001>
module attributes {stable_mosaic.version = 11 : i64} {
  func.func @_loss_siren_kernel(%arg0: i32, %arg1: memref<8x8x128xf32, #tpu.memory_space<vmem>>, %arg2: memref<5xf32, #tpu.memory_space<smem>>, %arg3: memref<4xf32, #tpu.memory_space<smem>>) attributes {dimension_semantics = [#tpu.dimension_semantics<arbitrary>], iteration_bounds = array<i64: 3>, scalar_prefetch = 0 : i64, scratch_operands = 1 : i64, tpu.core_type = #tpu.core_type<tc>, window_params = [{transform_indices = @transform_0, window_bounds = array<i64: 8, 8, 128>}, {transform_indices = @transform_1, window_bounds = array<i64: 5>}]} {
    %c0_i32 = arith.constant 0 : i32
    %0 = arith.cmpi eq, %arg0, %c0_i32 : i32
    %1 = arith.extui %0 : i1 to i32
    %c0_i32_0 = arith.constant 0 : i32
    %2 = arith.cmpi ne, %1, %c0_i32_0 : i32
    scf.if %2 {
      %cst_40 = arith.constant 0.000000e+00 : f32
      %c0_41 = arith.constant 0 : index
      %106 = memref.load %arg3[%c0_41] : memref<4xf32, #tpu.memory_space<smem>>
      memref.store %cst_40, %arg3[%c0_41] : memref<4xf32, #tpu.memory_space<smem>>
      %cst_42 = arith.constant 0.000000e+00 : f32
      %c1_43 = arith.constant 1 : index
      %107 = memref.load %arg3[%c1_43] : memref<4xf32, #tpu.memory_space<smem>>
      memref.store %cst_42, %arg3[%c1_43] : memref<4xf32, #tpu.memory_space<smem>>
      %cst_44 = arith.constant 0.000000e+00 : f32
      %c2_45 = arith.constant 2 : index
      %108 = memref.load %arg3[%c2_45] : memref<4xf32, #tpu.memory_space<smem>>
      memref.store %cst_44, %arg3[%c2_45] : memref<4xf32, #tpu.memory_space<smem>>
      %cst_46 = arith.constant 0.000000e+00 : f32
      %c3_47 = arith.constant 3 : index
      %109 = memref.load %arg3[%c3_47] : memref<4xf32, #tpu.memory_space<smem>>
      memref.store %cst_46, %arg3[%c3_47] : memref<4xf32, #tpu.memory_space<smem>>
    } else {
    }
    %c0 = arith.constant 0 : index
    %c0_1 = arith.constant 0 : index
    %c0_2 = arith.constant 0 : index
    %3 = vector.load %arg1[%c0, %c0_1, %c0_2] : memref<8x8x128xf32, #tpu.memory_space<vmem>>, vector<1x8x128xf32>
    %4 = vector.shape_cast %3 : vector<1x8x128xf32> to vector<8x128xf32>
    %c1 = arith.constant 1 : index
    %c0_3 = arith.constant 0 : index
    %c0_4 = arith.constant 0 : index
    %5 = vector.load %arg1[%c1, %c0_3, %c0_4] : memref<8x8x128xf32, #tpu.memory_space<vmem>>, vector<1x8x128xf32>
    %6 = vector.shape_cast %5 : vector<1x8x128xf32> to vector<8x128xf32>
    %c2 = arith.constant 2 : index
    %c0_5 = arith.constant 0 : index
    %c0_6 = arith.constant 0 : index
    %7 = vector.load %arg1[%c2, %c0_5, %c0_6] : memref<8x8x128xf32, #tpu.memory_space<vmem>>, vector<1x8x128xf32>
    %8 = vector.shape_cast %7 : vector<1x8x128xf32> to vector<8x128xf32>
    %c3 = arith.constant 3 : index
    %c0_7 = arith.constant 0 : index
    %c0_8 = arith.constant 0 : index
    %9 = vector.load %arg1[%c3, %c0_7, %c0_8] : memref<8x8x128xf32, #tpu.memory_space<vmem>>, vector<1x8x128xf32>
    %10 = vector.shape_cast %9 : vector<1x8x128xf32> to vector<8x128xf32>
    %c4 = arith.constant 4 : index
    %c0_9 = arith.constant 0 : index
    %c0_10 = arith.constant 0 : index
    %11 = vector.load %arg1[%c4, %c0_9, %c0_10] : memref<8x8x128xf32, #tpu.memory_space<vmem>>, vector<1x8x128xf32>
    %12 = vector.shape_cast %11 : vector<1x8x128xf32> to vector<8x128xf32>
    %c5 = arith.constant 5 : index
    %c0_11 = arith.constant 0 : index
    %c0_12 = arith.constant 0 : index
    %13 = vector.load %arg1[%c5, %c0_11, %c0_12] : memref<8x8x128xf32, #tpu.memory_space<vmem>>, vector<1x8x128xf32>
    %14 = vector.shape_cast %13 : vector<1x8x128xf32> to vector<8x128xf32>
    %c6 = arith.constant 6 : index
    %c0_13 = arith.constant 0 : index
    %c0_14 = arith.constant 0 : index
    %15 = vector.load %arg1[%c6, %c0_13, %c0_14] : memref<8x8x128xf32, #tpu.memory_space<vmem>>, vector<1x8x128xf32>
    %16 = vector.shape_cast %15 : vector<1x8x128xf32> to vector<8x128xf32>
    %c7 = arith.constant 7 : index
    %c0_15 = arith.constant 0 : index
    %c0_16 = arith.constant 0 : index
    %17 = vector.load %arg1[%c7, %c0_15, %c0_16] : memref<8x8x128xf32, #tpu.memory_space<vmem>>, vector<1x8x128xf32>
    %18 = vector.shape_cast %17 : vector<1x8x128xf32> to vector<8x128xf32>
    %19 = tpu.iota {dimensions = array<i32: 0>} : vector<8x128xi32>
    %20 = tpu.iota {dimensions = array<i32: 1>} : vector<8x128xi32>
    %c1024_i32 = arith.constant 1024 : i32
    %21 = arith.muli %arg0, %c1024_i32 : i32
    %c128_i32 = arith.constant 128 : i32
    %22 = vector.broadcast %c128_i32 : i32 to vector<8x128xi32>
    %23 = arith.muli %19, %22 : vector<8x128xi32>
    %24 = vector.broadcast %21 : i32 to vector<8x128xi32>
    %25 = arith.addi %24, %23 : vector<8x128xi32>
    %26 = arith.addi %25, %20 : vector<8x128xi32>
    %c2500_i32 = arith.constant 2500 : i32
    %27 = vector.broadcast %c2500_i32 : i32 to vector<8x128xi32>
    %28 = arith.cmpi slt, %26, %27 : vector<8x128xi32>
    %cst = arith.constant -1.000000e+00 : f32
    %29 = vector.broadcast %cst : f32 to vector<8x128xf32>
    %30 = arith.cmpf one, %4, %29 : vector<8x128xf32>
    %31 = arith.andi %30, %28 : vector<8x128xi1>
    %cst_17 = arith.constant dense<true> : vector<8x128xi1>
    %32 = arith.xori %30, %cst_17 : vector<8x128xi1>
    %33 = arith.andi %32, %28 : vector<8x128xi1>
    %34 = math.absf %6 : vector<8x128xf32>
    %cst_18 = arith.constant 0.000000e+00 : f32
    %35 = vector.broadcast %cst_18 : f32 to vector<8x128xf32>
    %36 = arith.select %31, %34, %35 : vector<8x128xi1>, vector<8x128xf32>
    %cst_19 = arith.constant -1.000000e+02 : f32
    %37 = vector.broadcast %cst_19 : f32 to vector<8x128xf32>
    %38 = arith.mulf %37, %34 : vector<8x128xf32>
    %39 = math.exp %38 : vector<8x128xf32>
    %cst_20 = arith.constant 0.000000e+00 : f32
    %40 = vector.broadcast %cst_20 : f32 to vector<8x128xf32>
    %41 = arith.select %33, %39, %40 : vector<8x128xi1>, vector<8x128xf32>
    %42 = arith.mulf %8, %8 : vector<8x128xf32>
    %43 = arith.mulf %10, %10 : vector<8x128xf32>
    %44 = arith.addf %42, %43 : vector<8x128xf32>
    %45 = arith.mulf %12, %12 : vector<8x128xf32>
    %46 = arith.addf %44, %45 : vector<8x128xf32>
    %47 = math.sqrt %46 : vector<8x128xf32>
    %48 = arith.mulf %14, %14 : vector<8x128xf32>
    %49 = arith.mulf %16, %16 : vector<8x128xf32>
    %50 = arith.addf %48, %49 : vector<8x128xf32>
    %51 = arith.mulf %18, %18 : vector<8x128xf32>
    %52 = arith.addf %50, %51 : vector<8x128xf32>
    %53 = math.sqrt %52 : vector<8x128xf32>
    %54 = arith.mulf %8, %14 : vector<8x128xf32>
    %55 = arith.mulf %10, %16 : vector<8x128xf32>
    %56 = arith.addf %54, %55 : vector<8x128xf32>
    %57 = arith.mulf %12, %18 : vector<8x128xf32>
    %58 = arith.addf %56, %57 : vector<8x128xf32>
    %cst_21 = arith.constant 9.99999993E-9 : f32
    %59 = vector.broadcast %cst_21 : f32 to vector<8x128xf32>
    %60 = arith.maximumf %47, %59 : vector<8x128xf32>
    %cst_22 = arith.constant 9.99999993E-9 : f32
    %61 = vector.broadcast %cst_22 : f32 to vector<8x128xf32>
    %62 = arith.maximumf %53, %61 : vector<8x128xf32>
    %63 = arith.mulf %60, %62 : vector<8x128xf32>
    %64 = tpu.reciprocal %63 {approx = true} : vector<8x128xf32> -> vector<8x128xf32>
    %65 = arith.mulf %58, %64 : vector<8x128xf32>
    %cst_23 = arith.constant 1.000000e+00 : f32
    %66 = vector.broadcast %cst_23 : f32 to vector<8x128xf32>
    %67 = arith.subf %66, %65 : vector<8x128xf32>
    %cst_24 = arith.constant 0.000000e+00 : f32
    %68 = vector.broadcast %cst_24 : f32 to vector<8x128xf32>
    %69 = arith.select %31, %67, %68 : vector<8x128xi1>, vector<8x128xf32>
    %cst_25 = arith.constant 1.000000e+00 : f32
    %70 = vector.broadcast %cst_25 : f32 to vector<8x128xf32>
    %71 = arith.subf %47, %70 : vector<8x128xf32>
    %72 = math.absf %71 : vector<8x128xf32>
    %cst_26 = arith.constant 0.000000e+00 : f32
    %73 = vector.broadcast %cst_26 : f32 to vector<8x128xf32>
    %74 = arith.select %28, %72, %73 : vector<8x128xi1>, vector<8x128xf32>
    %c0_27 = arith.constant 0 : index
    %75 = memref.load %arg3[%c0_27] : memref<4xf32, #tpu.memory_space<smem>>
    %76 = vector.shape_cast %36 : vector<8x128xf32> to vector<1x8x128xf32>
    %cst_28 = arith.constant dense<0.000000e+00> : vector<1xf32>
    %77 = vector.multi_reduction <add>, %76, %cst_28 [1, 2] : vector<1x8x128xf32> to vector<1xf32>
    %78 = vector.shape_cast %77 : vector<1xf32> to vector<1x1x1xf32>
    %79 = vector.extract %78[0, 0, 0] : f32 from vector<1x1x1xf32>
    %80 = arith.addf %75, %79 : f32
    %c0_29 = arith.constant 0 : index
    %81 = memref.load %arg3[%c0_29] : memref<4xf32, #tpu.memory_space<smem>>
    memref.store %80, %arg3[%c0_29] : memref<4xf32, #tpu.memory_space<smem>>
    %c1_30 = arith.constant 1 : index
    %82 = memref.load %arg3[%c1_30] : memref<4xf32, #tpu.memory_space<smem>>
    %83 = vector.shape_cast %41 : vector<8x128xf32> to vector<1x8x128xf32>
    %cst_31 = arith.constant dense<0.000000e+00> : vector<1xf32>
    %84 = vector.multi_reduction <add>, %83, %cst_31 [1, 2] : vector<1x8x128xf32> to vector<1xf32>
    %85 = vector.shape_cast %84 : vector<1xf32> to vector<1x1x1xf32>
    %86 = vector.extract %85[0, 0, 0] : f32 from vector<1x1x1xf32>
    %87 = arith.addf %82, %86 : f32
    %c1_32 = arith.constant 1 : index
    %88 = memref.load %arg3[%c1_32] : memref<4xf32, #tpu.memory_space<smem>>
    memref.store %87, %arg3[%c1_32] : memref<4xf32, #tpu.memory_space<smem>>
    %c2_33 = arith.constant 2 : index
    %89 = memref.load %arg3[%c2_33] : memref<4xf32, #tpu.memory_space<smem>>
    %90 = vector.shape_cast %69 : vector<8x128xf32> to vector<1x8x128xf32>
    %cst_34 = arith.constant dense<0.000000e+00> : vector<1xf32>
    %91 = vector.multi_reduction <add>, %90, %cst_34 [1, 2] : vector<1x8x128xf32> to vector<1xf32>
    %92 = vector.shape_cast %91 : vector<1xf32> to vector<1x1x1xf32>
    %93 = vector.extract %92[0, 0, 0] : f32 from vector<1x1x1xf32>
    %94 = arith.addf %89, %93 : f32
    %c2_35 = arith.constant 2 : index
    %95 = memref.load %arg3[%c2_35] : memref<4xf32, #tpu.memory_space<smem>>
    memref.store %94, %arg3[%c2_35] : memref<4xf32, #tpu.memory_space<smem>>
    %c3_36 = arith.constant 3 : index
    %96 = memref.load %arg3[%c3_36] : memref<4xf32, #tpu.memory_space<smem>>
    %97 = vector.shape_cast %74 : vector<8x128xf32> to vector<1x8x128xf32>
    %cst_37 = arith.constant dense<0.000000e+00> : vector<1xf32>
    %98 = vector.multi_reduction <add>, %97, %cst_37 [1, 2] : vector<1x8x128xf32> to vector<1xf32>
    %99 = vector.shape_cast %98 : vector<1xf32> to vector<1x1x1xf32>
    %100 = vector.extract %99[0, 0, 0] : f32 from vector<1x1x1xf32>
    %101 = arith.addf %96, %100 : f32
    %c3_38 = arith.constant 3 : index
    %102 = memref.load %arg3[%c3_38] : memref<4xf32, #tpu.memory_space<smem>>
    memref.store %101, %arg3[%c3_38] : memref<4xf32, #tpu.memory_space<smem>>
    %c2_i32 = arith.constant 2 : i32
    %103 = arith.cmpi eq, %arg0, %c2_i32 : i32
    %104 = arith.extui %103 : i1 to i32
    %c0_i32_39 = arith.constant 0 : i32
    %105 = arith.cmpi ne, %104, %c0_i32_39 : i32
    scf.if %105 {
      %c0_40 = arith.constant 0 : index
      %106 = memref.load %arg3[%c0_40] : memref<4xf32, #tpu.memory_space<smem>>
      %cst_41 = arith.constant 4.000000e-04 : f32
      %107 = arith.mulf %106, %cst_41 : f32
      %c1_42 = arith.constant 1 : index
      %108 = memref.load %arg3[%c1_42] : memref<4xf32, #tpu.memory_space<smem>>
      %cst_43 = arith.constant 4.000000e-04 : f32
      %109 = arith.mulf %108, %cst_43 : f32
      %c2_44 = arith.constant 2 : index
      %110 = memref.load %arg3[%c2_44] : memref<4xf32, #tpu.memory_space<smem>>
      %cst_45 = arith.constant 4.000000e-04 : f32
      %111 = arith.mulf %110, %cst_45 : f32
      %c3_46 = arith.constant 3 : index
      %112 = memref.load %arg3[%c3_46] : memref<4xf32, #tpu.memory_space<smem>>
      %cst_47 = arith.constant 4.000000e-04 : f32
      %113 = arith.mulf %112, %cst_47 : f32
      %cst_48 = arith.constant 3.000000e+03 : f32
      %114 = arith.mulf %107, %cst_48 : f32
      %cst_49 = arith.constant 1.000000e+02 : f32
      %115 = arith.mulf %109, %cst_49 : f32
      %116 = arith.addf %114, %115 : f32
      %cst_50 = arith.constant 1.000000e+02 : f32
      %117 = arith.mulf %111, %cst_50 : f32
      %118 = arith.addf %116, %117 : f32
      %cst_51 = arith.constant 5.000000e+01 : f32
      %119 = arith.mulf %113, %cst_51 : f32
      %120 = arith.addf %118, %119 : f32
      %c0_52 = arith.constant 0 : index
      %121 = memref.load %arg2[%c0_52] : memref<5xf32, #tpu.memory_space<smem>>
      memref.store %120, %arg2[%c0_52] : memref<5xf32, #tpu.memory_space<smem>>
      %c1_53 = arith.constant 1 : index
      %122 = memref.load %arg2[%c1_53] : memref<5xf32, #tpu.memory_space<smem>>
      memref.store %107, %arg2[%c1_53] : memref<5xf32, #tpu.memory_space<smem>>
      %c2_54 = arith.constant 2 : index
      %123 = memref.load %arg2[%c2_54] : memref<5xf32, #tpu.memory_space<smem>>
      memref.store %109, %arg2[%c2_54] : memref<5xf32, #tpu.memory_space<smem>>
      %c3_55 = arith.constant 3 : index
      %124 = memref.load %arg2[%c3_55] : memref<5xf32, #tpu.memory_space<smem>>
      memref.store %111, %arg2[%c3_55] : memref<5xf32, #tpu.memory_space<smem>>
      %c4_56 = arith.constant 4 : index
      %125 = memref.load %arg2[%c4_56] : memref<5xf32, #tpu.memory_space<smem>>
      memref.store %113, %arg2[%c4_56] : memref<5xf32, #tpu.memory_space<smem>>
    } else {
    }
    return
  }
  func.func @transform_0(%arg0: i32) -> (i32, i32, i32) {
    %c0_i32 = arith.constant 0 : i32
    %c0_i32_0 = arith.constant 0 : i32
    %c0_i32_1 = arith.constant 0 : i32
    return %c0_i32, %arg0, %c0_i32_0 : i32, i32, i32
  }
  func.func @transform_1(%arg0: i32) -> i32 {
    %c0_i32 = arith.constant 0 : i32
    %c0_i32_0 = arith.constant 0 : i32
    return %c0_i32 : i32
  }
}

</mosaic_0001>

<bundles_post_ra>
// kernel: tpu_custom_call.1
= control target key start
LH: loop header
LB: loop body
LE: loop exit
PB: predicated region body
PF: predicated region fallthrough
CT: control target
= control target key end

     0   :  { %6 = vsyncpa [#allocation4], 0  ;;  %s714_s0 = inlined_call_operand.hbm [shape: f32[8,24,128], index: 0, kind: input, shape index: {}]   ;;  %s715_s1 = inlined_call_operand.hbm [shape: f32[5], index: 1, kind: output, shape index: {}]  }
   0x1   :  { %8 = vsyncpa [#allocation4 + $0x1], 0 }
   0x2   :  { %9 = vsyncpa [#allocation5], 0  ;;  %s552_s6 = smov 0   ;;  %s554_s7 = smov 0  }
   0x3   :  { %s556_s8 = smov 0   ;;  %s558_s9 = smov 0  }
   0x4 LB: > { %s571_s10 = sadd.s32 4294967295, %s533_s9   ;;  %s574_s11 = sadd.s32 1, %s533_s9   ;;  %s533_s9 = sphi %s558_s9, %s728_s9   ;;  %s529_s8 = sphi %s556_s8, %s727_s8   ;;  %s525_s7 = sphi %s554_s7, %s726_s7   ;;  %s521_s6 = sphi %s552_s6, %s725_s6  }
   0x5   : > { %s19_s12 = ssub.s32 %s533_s9, %s574_s11  ;;  %s22_s13 = sadd.s32 1, %s529_s8 }
   0x6   : > { %p20_p0 = scmp.eq.s32.totalorder %s19_s12, 0  ;;  %p29_p1 = scmp.ne.s32.totalorder %s529_s8, %s525_s7 }
   0x7   : > { %p30_p2 = scmp.eq.s32.totalorder %s533_s9, 0  ;;  %p35_p3 = scmp.ne.s32.totalorder %s525_s7, %s521_s6 }
   0x8   : > { %s584_s14 = scalar_select %p20_p0, %s529_s8, %s22_s13  }
   0x9   : > { %p31_p4 = por %p30_p2, %p29_p1  ;;  %p716_p5 = scmp.eq.s32.totalorder %s571_s10, 0 }
   0xa   : > { %p402_p6 = scmp.lt.s32.totalorder %s533_s9, 3  ;;  %s80_s16 = sand.u32 1, %s529_s8  }
   0xb   : > { %p590_p7 = por %p716_p5, %p35_p3  ;;  %s348_s17 = sshll.u32 %s80_s16, 6 }
   0xc   : > { %s349_s18 = sshll.u32 %s533_s9, 7  ;;  %s84_s22 = scalar_lea.vmem [#allocation3], %s348_s17 }
   0xd   : > { %s599_s21 = scalar_lea.hbm %s714_s0, %s349_s18  ;;  %s90_s23 = sshll.u32 %s84_s22, 4  ;;  %s601_s23 = int_to_ptr.vmem [resolvable:$true] %s90_s23 }
   0xe   : > { %p603_p8 = pnand %p402_p6, %p31_p4  ;;  %s607_s25 = scalar_lea.sflag [#allocation4], %s80_s16 }
   0xf   : > { %s453_s26 = scalar_lea.hbm %s599_s21, 1024  ;;  %s458_s29 = scalar_lea.hbm %s714_s0, 3072 }
  0x10   : > { %p454_p9 = scmp.ne.s32.totalorder %s599_s21, %s453_s26  ;;  %p455_p10 = pneg %p603_p8 }
  0x11   : > { %p459_p13 = scmp.lt.u32.totalorder %s599_s21, %s714_s0  ;;  %p460_p0 = scmp.lt.u32.totalorder %s458_s29, %s453_s26 }
  0x12   : > { %p456_p11 = pnand %p455_p10, %p454_p9  ;;  %p462_p2 = scmp.lt.u32.totalorder %s453_s26, %s599_s21 }
  0x13   : > { %p461_p1 = por %p460_p0, %p459_p13 }
  0x14   : > { %p457_p12 = pneg %p456_p11 }
  0x15   : > { %p463_p3 = por %p462_p2, %p461_p1 }
  0x17   : > { %p464_p4 = pnand %p463_p3, %p457_p12 }
  0x19   : > { %467 = shalt.err (!%p464_p4)
}
  0x1a   : > { %s468_s3 = scalar_lea.vmem %s601_s23, 1024  ;;  %s535_s4 = smov [#allocation3]  }
  0x1b   : > { %p469_p6 = scmp.ne.s32.totalorder %s601_s23, %s468_s3  ;;  %s473_s5 = sshll.u32 %s535_s4, 4  ;;  %s474_s5 = int_to_ptr.vmem [resolvable:$false] %s473_s5 }
  0x1c   : > { %s475_s6 = scalar_lea.vmem %s474_s5, 2048  ;;  %p476_p5 = scmp.lt.s32.totalorder %s601_s23, %s474_s5 }
  0x1d   : > { %p471_p9 = pnand %p469_p6, %p455_p10  ;;  %p477_p13 = scmp.lt.s32.totalorder %s475_s6, %s468_s3 }
  0x1f   : > { %p472_p11 = pneg %p471_p9  ;;  %p478_p0 = por %p477_p13, %p476_p5 }
  0x21   : > { %p479_p1 = pnand %p478_p0, %p472_p11 }
  0x23   : > { %482 = shalt.err (!%p479_p1)
}
  0x24   : > { %s536_s12 = smov 384   ;;  %s537_s13 = smov 128  }
  0x25   : > { %s538_s16 = smov 8   ;;  %p350_p10 = scmp.ge.s32.totalorder %s533_s9, 1 }
  0x26   : > { %401 = dma.hbm_to_vmem [thread:$0]  (!%p603_p8), %s599_s21, 1024, %s601_s23, %s607_s25, %s536_s12, %s537_s13, %s538_s16  }
  0x27   : > { %p98_p12 = scmp.lt.s32.totalorder %s533_s9, 4 }
  0x29   : > { %p99_p2 = pnand %p350_p10, %p98_p12 }
  0x2a   : > { %s104_s17 = sand.u32 (!%p99_p2), 1, %s525_s7  }
  0x2b   : > { %102 = sbr.rel (%p99_p2) target bundleno = 318 (0x13e), region = 24  ;;  %s351_s18 = sshll.u32 (!%p99_p2), %s104_s17, 6 }
  0x2c   : > { %s105_s19 = scalar_lea.sflag (!%p99_p2), [#allocation4], %s104_s17  ;;  %s108_s20 = scalar_lea.vmem (!%p99_p2), [#allocation3], %s351_s18 }
  0x32   : > { %512 = dma.done.wait (%p590_p7), %s105_s19, 1024  }
  0x33   : > { %514 = vsyncadd (%p590_p7), %s105_s19, 4294966272  ;;  %v149_v0 = vlaneseq  ;;  %s360_s22 = sshll.u32 %s571_s10, 10  ;;  %v134_v6 = vld [vmem:[%s108_s20] sm:$0xff]  ;;  %v353_v7 = vld [vmem:[%s108_s20 + $0x8] sm:$0xff]  ;;  %vm539_vm3 = vmmov 1   ;;  %s540_s9 = smov 0.0  }
  0x34   : > { %v155_v2 = vstv %s360_s22  ;;  %v354_v8 = vld [vmem:[%s108_s20 + $0x10] sm:$0xff]  ;;  %vm159_vm0 = vcmp.ne.f32.partialorder %v134_v6, -1.0  ;;  %v163_v10 = vand.u32 2147483647, %v353_v7  ;;  %v355_v11 = vld [vmem:[%s108_s20 + $0x18] sm:$0xff]  ;;  %v356_v12 = vld [vmem:[%s108_s20 + $0x20] sm:$0xff] }
  0x35   : > { %v150_v1 = vshrl.u32 %v149_v0, 7  ;;  %v152_v3 = vand.u32 127, %v149_v0  ;;  %v357_v13 = vld [vmem:[%s108_s20 + $0x28] sm:$0xff]  ;;  %v169_v14 = vmul.f32 %v354_v8, %v354_v8  ;;  %v358_v15 = vld [vmem:[%s108_s20 + $0x30] sm:$0xff]  ;;  %v359_v16 = vld [vmem:[%s108_s20 + $0x38] sm:$0xff]  ;;  %v170_v17 = vmul.f32 %v355_v11, %v355_v11  ;;  %p721_p5 = scmp.eq.s32.totalorder %s571_s10, 0 }
  0x36   : > { %v172_v18 = vmul.f32 %v356_v12, %v356_v12  ;;  %v181_v19 = vmul.f32 %v357_v13, %v357_v13  ;;  %v165_v20 = vmul.f32 -100.0, %v163_v10  ;;  %v182_v21 = vmul.f32 %v358_v15, %v358_v15  ;;  %vm161_vm4 = vmxor %vm159_vm0, %vm539_vm3  ;;  %p404_p4 = scmp.eq.s32.totalorder %s571_s10, 2 }
  0x37   : > { %v154_v4 = vmul.u32 128, %v150_v1  ;;  %v184_v22 = vmul.f32 %v359_v16, %v359_v16  ;;  %v171_v24 = vadd.f32 %v170_v17, %v169_v14  ;;  %v193_v45 = vmul.f32 %v357_v13, %v354_v8  ;;  %384 = sst [smem:[#allocation2]] (%p721_p5), %s540_s9  ;;  %p722_p7 = pmov %p721_p5 }
  0x38   : > { %v166_v26 = vmul.f32 1.442695, %v165_v20  ;;  %v183_v27 = vadd.f32 %v182_v21, %v181_v19  ;;  %v194_v46 = vmul.f32 %v358_v15, %v355_v11  ;;  %v196_v48 = vmul.f32 %v359_v16, %v356_v12  ;;  %p723_p8 = pmov %p721_p5  ;;  %p724_p3 = pmov %p721_p5 }
  0x39   : > { %v156_v5 = vadd.s32 %v155_v2, %v154_v4  ;;  %v173_v28 = vadd.f32 %v172_v18, %v171_v24  ;;  %385 = sst [smem:[#allocation2 + $0x1]] (%p722_p7), %s540_s9  ;;  %s208_s15 = sld [smem:[#allocation2]] }
  0x3a   : > { %445 = vpow2.f32 %v166_v26  ;;  %v185_v29 = vadd.f32 %v184_v22, %v183_v27  ;;  %v195_v47 = vadd.f32 %v194_v46, %v193_v45  ;;  %386 = sst [smem:[#allocation2 + $0x2]] (%p723_p8), %s540_s9  ;;  %s362_s25 = sld [smem:[#allocation2 + $0x1]] }
  0x3b   : > { %v643_v9 = vadd.s32 %v156_v5, %v152_v3  ;;  %447 = vrsqrt.f32 %v173_v28  ;;  %vm176_vm6 = vcmp.eq.f32.partialorder %v173_v28, inf  ;;  %v179_v33 = vand.u32 2147483648, %v173_v28  ;;  %387 = sst [smem:[#allocation2 + $0x3]] (%p724_p3), %s540_s9  ;;  %s363_s29 = sld [smem:[#allocation2 + $0x2]] }
  0x3c   : > { %449 = vrsqrt.f32 %v185_v29  ;;  %vm178_vm7 = vcmp.eq.f32.partialorder %v173_v28, 0.0  ;;  %vm188_vm8 = vcmp.eq.f32.partialorder %v185_v29, inf  ;;  %v191_v36 = vand.u32 2147483648, %v185_v29  ;;  %s364_s30 = sld [smem:[#allocation2 + $0x3]] }
  0x3d   : > { %vm158_vm1 = vcmp.lt.s32.totalorder %v643_v9, 2500  ;;  %vm190_vm9 = vcmp.eq.f32.partialorder %v185_v29, 0.0  ;;  %v197_v49 = vadd.f32 %v196_v48, %v195_v47 }
  0x3e   : > { %vm649_vm2 = vmand %vm159_vm0, %vm158_vm1 }
  0x3f   : > { %v164_v25 = vsel %vm649_vm2, %v163_v10, 0.0  ;;  %vm162_vm5 = vmand %vm161_vm4, %vm158_vm1 }
  0x40   : > { %209 = vadd.xlane.f32.xlu0 %v164_v25 }
  0x44   : > { %v446_v30 = vpop.eup %445 }
  0x45   : > { %v448_v31 = vpop.eup %447  ;;  %v168_v32 = vsel %vm162_vm5, %v446_v30, 0.0 }
  0x46   : > { %v450_v34 = vpop.eup %449  ;;  %222 = vadd.xlane.f32.xlu0 %v168_v32  ;;  %v175_v35 = vmul.f32 %v448_v31, %v173_v28 }
  0x47   : > { %v187_v37 = vmul.f32 %v450_v34, %v185_v29 }
  0x48   : > { %v177_v38 = vsel %vm176_vm6, %v173_v28, %v175_v35 }
  0x49   : > { %v180_v39 = vsel %vm178_vm7, %v179_v33, %v177_v38  ;;  %v189_v40 = vsel %vm188_vm8, %v185_v29, %v187_v37 }
  0x4a   : > { %v192_v41 = vsel %vm190_vm9, %v191_v36, %v189_v40  ;;  %v198_v42 = vmax.f32 %v180_v39, 1e-08  ;;  %v361_v50 = vadd.f32 -1.0, %v180_v39 }
  0x4b   : > { %v199_v43 = vmax.f32 %v192_v41, 1e-08 }
  0x4c   : > { %v206_v54 = vand.u32 2147483647, %v361_v50 }
  0x4d   : > { %v200_v44 = vmul.f32 %v199_v43, %v198_v42 }
  0x4e   : > { %v207_v56 = vsel %vm158_vm1, %v206_v54, 0.0 }
  0x4f   : > { %451 = vrcp.f32 %v200_v44 }
  0x59   : > { %v452_v51 = vpop.eup %451 }
  0x5a   : > { %v202_v52 = vmul.f32 %v452_v51, %v197_v49 }
  0x5c   : > { %v203_v53 = vsub.f32 1.0, %v202_v52 }
  0x5e   : > { %v204_v55 = vsel %vm649_vm2, %v203_v53, 0.0 }
  0x5f   : > { %235 = vadd.xlane.f32.xlu1 %v204_v55 }
  0x63   : > { %248 = vadd.xlane.f32.xlu1 %v207_v56 }
  0xcd   : > { %v210_v57 = vpop.xlane.xlu0 %209 }
  0xce   : > { %v211_v58 = vrot.slane %v210_v57, 4 }
  0xd0   : > { %v212_v59 = vadd.f32 %v211_v58, %v210_v57 }
  0xd2   : > { %v213_v60 = vrot.slane %v212_v59, 2 }
  0xd3   : > { %v223_v0 = vpop.xlane.xlu0 %222 }
  0xd4   : > { %v214_v61 = vadd.f32 %v213_v60, %v212_v59  ;;  %v224_v1 = vrot.slane %v223_v0, 4 }
  0xd6   : > { %v215_v62 = vrot.slane %v214_v61, 1  ;;  %v225_v2 = vadd.f32 %v224_v1, %v223_v0 }
  0xd8   : > { %v216_v63 = vadd.f32 %v215_v62, %v214_v61  ;;  %v226_v3 = vrot.slane %v225_v2, 2 }
  0xda   : > { %373 = vpush %v216_v63  ;;  %v227_v4 = vadd.f32 %v226_v3, %v225_v2 }
  0xdc   : > { %v228_v5 = vrot.slane %v227_v4, 1 }
  0xde   : > { %v229_v6 = vadd.f32 %v228_v5, %v227_v4 }
  0xe0   : > { %375 = vpush %v229_v6 }
  0xec   : > { %v236_v7 = vpop.xlane.xlu1 %235 }
  0xed   : > { %v237_v8 = vrot.slane %v236_v7, 4 }
  0xef   : > { %v238_v9 = vadd.f32 %v237_v8, %v236_v7 }
  0xf0   : > { %v249_v10 = vpop.xlane.xlu1 %248 }
  0xf1   : > { %v239_v11 = vrot.slane %v238_v9, 2  ;;  %v250_v12 = vrot.slane %v249_v10, 4 }
  0xf3   : > { %v251_v13 = vadd.f32 %v250_v12, %v249_v10  ;;  %v240_v14 = vadd.f32 %v239_v11, %v238_v9 }
  0xf5   : > { %v252_v15 = vrot.slane %v251_v13, 2  ;;  %v241_v16 = vrot.slane %v240_v14, 1 }
  0xf7   : > { %v253_v17 = vadd.f32 %v252_v15, %v251_v13  ;;  %v242_v18 = vadd.f32 %v241_v16, %v240_v14 }
  0xf9   : > { %377 = vpush %v242_v18  ;;  %v254_v19 = vrot.slane %v253_v17, 1 }
  0xfb   : > { %v255_v20 = vadd.f32 %v254_v19, %v253_v17 }
  0xfd   : > { %379 = vpush %v255_v20 }
 0x10b   : > { %s374_s21 = spop %373 }
 0x10c   : > { %s218_s23 = sadd.f32 %s374_s21, %s208_s15  ;;  %s483_s21 = scalar_lea.hbm %s715_s1, 16 }
 0x10d   : > { %p484_p6 = scmp.ne.s32.totalorder %s715_s1, %s483_s21  ;;  %p489_p13 = scmp.lt.u32.totalorder %s483_s21, %s715_s1 }
 0x10e   : > { %220 = sst [smem:[#allocation2]] %s218_s23  ;;  %s265_s24 = smul.f32 0.0004, %s218_s23 }
 0x10f   : > { %p485_p9 = pnand %p484_p6, %p404_p4 }
 0x110   : > { %390 = sst [smem:[#allocation6 + $0x1]] (%p404_p4), %s265_s24  ;;  %s272_s2 = smul.f32 3000.0, %s265_s24 }
 0x111   : > { %s376_s26 = spop %375  ;;  %p486_p11 = pneg %p485_p9 }
 0x112   : > { %s231_s27 = sadd.f32 %s376_s26, %s362_s25 }
 0x113   : > { %p491_p0 = pnand %p489_p13, %p486_p11 }
 0x114   : > { %233 = sst [smem:[#allocation2 + $0x1]] %s231_s27  ;;  %s267_s28 = smul.f32 0.0004, %s231_s27 }
 0x116   : > { %391 = sst [smem:[#allocation6 + $0x2]] (%p404_p4), %s267_s28  ;;  %s273_s3 = smul.f32 100.0, %s267_s28 }
 0x118   : > { %s274_s12 = sadd.f32 %s273_s3, %s272_s2 }
 0x12a   : > { %s378_s4 = spop %377 }
 0x12b   : > { %s244_s5 = sadd.f32 %s378_s4, %s363_s29 }
 0x12d   : > { %246 = sst [smem:[#allocation2 + $0x2]] %s244_s5  ;;  %s269_s6 = smul.f32 0.0004, %s244_s5 }
 0x12e   : > { %s380_s13 = spop %379 }
 0x12f   : > { %s275_s16 = smul.f32 100.0, %s269_s6  ;;  %s257_s17 = sadd.f32 %s380_s13, %s364_s30 }
 0x130   : > { %392 = sst [smem:[#allocation6 + $0x3]] (%p404_p4), %s269_s6 }
 0x131   : > { %s276_s18 = sadd.f32 %s275_s16, %s274_s12  ;;  %s271_s19 = smul.f32 0.0004, %s257_s17 }
 0x132   : > { %259 = sst [smem:[#allocation2 + $0x3]] %s257_s17 }
 0x133   : > { %s277_s20 = smul.f32 50.0, %s271_s19  ;;  %393 = sst [smem:[#allocation6 + $0x4]] (%p404_p4), %s271_s19 }
 0x135   : > { %s278_s22 = sadd.f32 %s277_s20, %s276_s18 }
 0x137   : > { %389 = sst [smem:[#allocation6]] (%p404_p4), %s278_s22 }
 0x138   : > { %494 = shalt.err (!%p491_p0)
}
 0x139   : > { %s541_s27 = smov [#allocation6]  }
 0x13a   : > { %395 = dma.smem_to_hbm (%p404_p4), %s541_s27, 16, %s715_s1, [#allocation5]  }
 0x13b   : > { %516 = dma.done.wait (%p404_p4), [#allocation5], 16  }
 0x13c   : > { %518 = vsyncadd (%p404_p4), [#allocation5], 4294967280 }
 0x13d   : > { %302 = sfence }
 0x13e PF: > { %p12_p1 = scmp.ge.s32.totalorder %s574_s11, 5   ;;  %s725_s6 = smov %s525_s7 }
 0x13f   : > { %s726_s7 = smov %s529_s8  ;;  %s727_s8 = smov %s584_s14 }
 0x140   : > { %s728_s9 = smov %s574_s11  ;;  %14 = sbr.rel (!%p12_p1) target bundleno = 4 (0x4), region = 89 }
 0x147   :  { %308 = vsyncpa [#allocation4], 1 }
 0x148   :  { %310 = vsyncpa [#allocation4 + $0x1], 1 }
 0x149   :  { %311 = vsyncpa [#allocation5], 1 }
 0x14a   :  { %313 = vsyncpa [#allocation5 + $0x1], 1 }

</bundles_post_ra>
